<compile_context>
chip_gen: v7x
topology: tpu7x:2x2x1
jax: 0.10.0
libtpu: 0.0.40
codegen_flags: <defaults>
</compile_context>

<pallas_src>
import functools
import math

import jax
import jax.numpy as jnp
from jax.experimental import pallas as pl
from jax.experimental.pallas import tpu as pltpu

_DEFAULT_EPS = 1e-5
_LANES = 128


def _ln_kernel_std(x_ref, w_ref, b_ref, o_ref, *, eps):
    """Standard path: the normalized axis is the (full) lane axis."""
    x = x_ref[...].astype(jnp.float32)                       # (TM, H)
    mean = jnp.mean(x, axis=-1, keepdims=True)
    ex2 = jnp.mean(x * x, axis=-1, keepdims=True)
    var = ex2 - mean * mean                                   # biased (PyTorch)
    inv = jax.lax.rsqrt(var + eps)
    y = (x - mean) * inv * w_ref[...] + b_ref[...]
    o_ref[...] = y.astype(o_ref.dtype)


def _ln_kernel_packed(x_ref, p_ref, w_ref, b_ref, o_ref, *, eps):
    """Lane-dense path for H < 128, 128 % H == 0.

    x_ref: (TM, 128) with k = 128//H logical rows folded into the lane axis.
    p_ref: (128, 128) f32, P[i, j] = 1/H if lanes i, j belong to the same
           folded row else 0.  x @ P gives the per-row mean broadcast back
           across that row's lanes; (x*x) @ P gives E[x^2] likewise.
    HIGHEST matmul precision keeps the statistics at ~f32 accuracy.
    """
    x = x_ref[...].astype(jnp.float32)                        # (TM, 128)
    p = p_ref[...]                                            # (128, 128)
    mean = jnp.dot(x, p, preferred_element_type=jnp.float32,
                   precision=jax.lax.Precision.HIGHEST)
    ex2 = jnp.dot(x * x, p, preferred_element_type=jnp.float32,
                  precision=jax.lax.Precision.HIGHEST)
    var = ex2 - mean * mean
    inv = jax.lax.rsqrt(var + eps)
    y = (x - mean) * inv * w_ref[...] + b_ref[...]
    o_ref[...] = y.astype(o_ref.dtype)


def _vmem_capacity_bytes():
    """Physical VMEM of the current chip; conservative v7x default on failure."""
    try:
        info = pltpu.get_tpu_info()
        cap = getattr(info, "vmem_capacity_bytes", None)
        if cap:
            return int(cap)
    except Exception:
        pass
    return 64 << 20


def _pick_tile_rows(rows, width, itemsize, vmem_bytes):
    """Row tile sized from (a) an ~8 MiB input-block target (amortizes the
    ~0.35 us/step overhead on v6e/v7x HBM bandwidths) and (b) a per-generation
    VMEM-fit budget counting double-buffered in/out blocks plus ~3 full-tile
    f32 temporaries; then shaped so both v7x TensorCores get pipelined work."""
    sub = max(8, 32 // max(1, itemsize))          # sublane packing multiple
    if rows <= sub:
        return rows                               # single full-extent block
    per_row = width * (4 * itemsize + 3 * 4)      # 2x in + 2x out + f32 temps
    budget = max(8 << 20, int(vmem_bytes * 0.70)) - (4 << 20)
    tm_fit = max(sub, budget // per_row)
    tm_target = max(sub, (8 << 20) // (width * itemsize))
    tm = min(tm_fit, tm_target, rows)
    tm = max(sub, (tm // sub) * sub)
    # >= 4 grid steps (>= 2 per v7x TensorCore) when there is enough work.
    if rows >= 4 * sub and tm * 4 > rows:
        tm = max(sub, (rows // (4 * sub)) * sub)
    # Best effort: even step count so the two v7x cores get equal work.
    steps = -(-rows // tm)
    if steps > 1 and steps % 2 == 1:
        tm_alt = -(-rows // (steps + 1))
        tm_alt = -(-tm_alt // sub) * sub
        if sub <= tm_alt < tm and (-(-rows // tm_alt)) % 2 == 0:
            tm = tm_alt
    return min(tm, rows)


def layer_norm(x, weight, bias=None, *, eps=_DEFAULT_EPS, tile_rows=None,
               _allow_packed=True):
    """LayerNorm over the last dim of x. weight: (ndim,), bias: (ndim,) or None."""
    ndim = int(weight.shape[0])
    assert x.shape[-1] == ndim
    orig_shape = x.shape
    rows = int(math.prod(orig_shape[:-1]))
    itemsize = jnp.dtype(x.dtype).itemsize
    phys_vmem = _vmem_capacity_bytes()

    # Tiny affine params: cast to f32 once in the wrapper (hoisted out of the
    # kernel).  bias=None folds to zeros; the (1, width) block is fetched once
    # for the whole grid (constant index map), so the extra stream is free.
    w_f32 = weight.astype(jnp.float32)
    b_f32 = bias.astype(jnp.float32) if bias is not None else jnp.zeros(
        (ndim,), jnp.float32)

    k = _LANES // ndim if (0 < ndim < _LANES and _LANES % ndim == 0) else 1
    use_packed = _allow_packed and k > 1 and rows > 0 and rows % k == 0
    # TODO(synk): lane-dense packing for H that neither divides 128 nor is a
    # multiple of 128 (lcm-based fold) still falls back to masked stores.

    if use_packed:
        width = _LANES
        rows_eff = rows // k
        x2 = x.reshape(rows_eff, width)                    # free reshape
        w2 = jnp.tile(w_f32, k).reshape(1, width)
        b2 = jnp.tile(b_f32, k).reshape(1, width)
        seg = jnp.arange(width) // ndim
        pmat = (seg[:, None] == seg[None, :]).astype(jnp.float32) / float(ndim)
    else:
        width = ndim
        rows_eff = rows
        x2 = x.reshape(rows_eff, width)
        w2 = w_f32.reshape(1, width)
        b2 = b_f32.reshape(1, width)
        pmat = None

    tm = tile_rows if tile_rows is not None else _pick_tile_rows(
        rows_eff, width, itemsize, phys_vmem)
    tm = max(1, min(int(tm), rows_eff))
    grid = (pl.cdiv(rows_eff, tm),)       # partial last block is masked

    block_bytes = tm * width * itemsize
    param_bytes = (width * width * 4 if use_packed else 0) + 2 * width * 4
    needed = 4 * block_bytes + 3 * tm * width * 4 + param_bytes + (4 << 20)
    vmem_limit = int(min(max(needed, 32 << 20), int(phys_vmem * 0.9)))

    matmul_flops = 4 * rows_eff * width * width if use_packed else 0
    cost = pl.CostEstimate(
        flops=int(8 * rows * ndim + matmul_flops),
        transcendentals=int(rows),
        bytes_accessed=int(2 * rows * ndim * itemsize + param_bytes),
    )
    compiler_params = pltpu.CompilerParams(
        dimension_semantics=("parallel",),
        vmem_limit_bytes=vmem_limit,
    )

    # TODO(synk): if an xprof trace on v7x still shows exposed input DMA after
    # the larger tiles, sweep pipeline_mode=pl.Buffered(3) on x_spec only.
    x_spec = pl.BlockSpec((tm, width), lambda i: (i, 0))
    prm_spec = pl.BlockSpec((1, width), lambda i: (0, 0))
    out_spec = pl.BlockSpec((tm, width), lambda i: (i, 0))
    out_shape = jax.ShapeDtypeStruct((rows_eff, width), x.dtype)

    if use_packed:
        p_spec = pl.BlockSpec((width, width), lambda i: (0, 0))
        try:
            out = pl.pallas_call(
                functools.partial(_ln_kernel_packed, eps=float(eps)),
                out_shape=out_shape,
                grid_spec=pltpu.PrefetchScalarGridSpec(
                    num_scalar_prefetch=0, grid=grid,
                    in_specs=[x_spec, p_spec, prm_spec, prm_spec],
                    out_specs=out_spec),
                compiler_params=compiler_params,
                cost_estimate=cost,
            )(x2, pmat, w2, b2)
        except Exception:
            # Belt-and-braces: if the packed lowering is unsupported on this
            # jax/Mosaic build, fall back to the (correct) standard kernel.
            return layer_norm(x, weight, bias, eps=eps, tile_rows=tile_rows,
                              _allow_packed=False)
    else:
        out = pl.pallas_call(
            functools.partial(_ln_kernel_std, eps=float(eps)),
            out_shape=out_shape,
            grid_spec=pltpu.PrefetchScalarGridSpec(
                num_scalar_prefetch=0, grid=grid,
                in_specs=[x_spec, prm_spec, prm_spec],
                out_specs=out_spec),
            compiler_params=compiler_params,
            cost_estimate=cost,
        )(x2, w2, b2)
    return out.reshape(orig_shape)


if __name__ == "__main__":
    key = jax.random.PRNGKey(0)
    batch, seq, hidden = 2, 8, 32

    # Module __init__ defaults: weight = ones(ndim), bias arg None -> no bias.
    weight = jnp.ones((hidden,), dtype=jnp.float32)
    bias = None
    x = jax.random.normal(key, (batch, seq, hidden), dtype=jnp.float32)

    y = layer_norm(x, weight, bias)           # packed (lane-dense) path, H=32
    jax.block_until_ready(y)

    mean = jnp.mean(x, axis=-1, keepdims=True)
    var = jnp.mean((x - mean) ** 2, axis=-1, keepdims=True)
    ref = (x - mean) / jnp.sqrt(var + 1e-5) * weight
    assert jnp.allclose(y, ref, atol=1e-4, rtol=1e-4), float(
        jnp.max(jnp.abs(y - ref)))

    # Bias path (nn.Parameter(zeros) semantics) on the same shape.
    y_b = layer_norm(x, weight, jnp.zeros((hidden,), dtype=jnp.float32))
    jax.block_until_ready(y_b)
    assert jnp.allclose(y_b, ref, atol=1e-4, rtol=1e-4)

    # Also exercise the standard (H >= 128, already lane-dense) path once.
    kw, kb, kx = jax.random.split(jax.random.PRNGKey(1), 3)
    hidden2 = 256
    w2 = jax.random.normal(kw, (hidden2,), jnp.float32)
    b2 = jax.random.normal(kb, (hidden2,), jnp.float32)
    x2 = jax.random.normal(kx, (4, 8, hidden2), jnp.float32)
    y2 = layer_norm(x2, w2, b2)
    jax.block_until_ready(y2)
    m2 = jnp.mean(x2, axis=-1, keepdims=True)
    v2 = jnp.mean((x2 - m2) ** 2, axis=-1, keepdims=True)
    ref2 = (x2 - m2) / jnp.sqrt(v2 + 1e-5) * w2 + b2
    assert jnp.allclose(y2, ref2, atol=1e-4, rtol=1e-4)

    print("KERNEL_OK")
</pallas_src>

<mosaic_0001>
module attributes {stable_mosaic.version = 11 : i64} {
  func.func @_ln_kernel_packed(%arg0: i32, %arg1: memref<4x128xf32, #tpu.memory_space<vmem>>, %arg2: memref<128x128xf32, #tpu.memory_space<vmem>>, %arg3: memref<1x128xf32, #tpu.memory_space<vmem>>, %arg4: memref<1x128xf32, #tpu.memory_space<vmem>>, %arg5: memref<4x128xf32, #tpu.memory_space<vmem>>) attributes {dimension_semantics = [#tpu.dimension_semantics<parallel>], iteration_bounds = array<i64: 1>, scalar_prefetch = 0 : i64, scratch_operands = 0 : i64, tpu.core_type = #tpu.core_type<tc>, window_params = [{transform_indices = @transform_0, window_bounds = array<i64: 4, 128>}, {pipeline_mode = #tpu.pipeline_mode<synchronous>, transform_indices = @transform_1, window_bounds = array<i64: 128, 128>}, {pipeline_mode = #tpu.pipeline_mode<synchronous>, transform_indices = @transform_2, window_bounds = array<i64: 1, 128>}, {pipeline_mode = #tpu.pipeline_mode<synchronous>, transform_indices = @transform_3, window_bounds = array<i64: 1, 128>}, {transform_indices = @transform_4, window_bounds = array<i64: 4, 128>}]} {
    %c0 = arith.constant 0 : index
    %c0_0 = arith.constant 0 : index
    %0 = vector.load %arg1[%c0, %c0_0] : memref<4x128xf32, #tpu.memory_space<vmem>>, vector<4x128xf32>
    %c0_1 = arith.constant 0 : index
    %c0_2 = arith.constant 0 : index
    %1 = vector.load %arg2[%c0_1, %c0_2] : memref<128x128xf32, #tpu.memory_space<vmem>>, vector<128x128xf32>
    %cst = arith.constant dense<0.000000e+00> : vector<4x128xf32>
    %2 = tpu.matmul %0, %1, %cst {dimension_numbers = #tpu.dot_dimension_numbers<[1], [0], [0], [1], [0, 0, 1, 1], [], []>, precision = #tpu.contract_precision<fp32>} : vector<4x128xf32>, vector<128x128xf32>, vector<4x128xf32> -> vector<4x128xf32>
    %3 = arith.mulf %0, %0 : vector<4x128xf32>
    %cst_3 = arith.constant dense<0.000000e+00> : vector<4x128xf32>
    %4 = tpu.matmul %3, %1, %cst_3 {dimension_numbers = #tpu.dot_dimension_numbers<[1], [0], [0], [1], [0, 0, 1, 1], [], []>, precision = #tpu.contract_precision<fp32>} : vector<4x128xf32>, vector<128x128xf32>, vector<4x128xf32> -> vector<4x128xf32>
    %5 = arith.mulf %2, %2 : vector<4x128xf32>
    %6 = arith.subf %4, %5 : vector<4x128xf32>
    %cst_4 = arith.constant 9.99999974E-6 : f32
    %7 = vector.broadcast %cst_4 : f32 to vector<4x128xf32>
    %8 = arith.addf %6, %7 : vector<4x128xf32>
    %9 = math.rsqrt %8 : vector<4x128xf32>
    %10 = arith.subf %0, %2 : vector<4x128xf32>
    %11 = arith.mulf %10, %9 : vector<4x128xf32>
    %c0_5 = arith.constant 0 : index
    %c0_6 = arith.constant 0 : index
    %12 = vector.load %arg3[%c0_5, %c0_6] : memref<1x128xf32, #tpu.memory_space<vmem>>, vector<1x128xf32>
    %13 = vector.broadcast %12 : vector<1x128xf32> to vector<4x128xf32>
    %14 = arith.mulf %11, %13 : vector<4x128xf32>
    %c0_7 = arith.constant 0 : index
    %c0_8 = arith.constant 0 : index
    %15 = vector.load %arg4[%c0_7, %c0_8] : memref<1x128xf32, #tpu.memory_space<vmem>>, vector<1x128xf32>
    %16 = vector.broadcast %15 : vector<1x128xf32> to vector<4x128xf32>
    %17 = arith.addf %14, %16 : vector<4x128xf32>
    %c0_9 = arith.constant 0 : index
    %c0_10 = arith.constant 0 : index
    %18 = vector.load %arg5[%c0_9, %c0_10] : memref<4x128xf32, #tpu.memory_space<vmem>>, vector<4x128xf32>
    tpu.vector_store %arg5[%c0_9, %c0_10], %17 {strides = array<i32>} : memref<4x128xf32, #tpu.memory_space<vmem>>, vector<4x128xf32>,
    return
  }
  func.func @transform_0(%arg0: i32) -> (i32, i32) {
    %c0_i32 = arith.constant 0 : i32
    %c0_i32_0 = arith.constant 0 : i32
    return %arg0, %c0_i32 : i32, i32
  }
  func.func @transform_1(%arg0: i32) -> (i32, i32) {
    %c0_i32 = arith.constant 0 : i32
    %c0_i32_0 = arith.constant 0 : i32
    %c0_i32_1 = arith.constant 0 : i32
    return %c0_i32, %c0_i32_0 : i32, i32
  }
  func.func @transform_2(%arg0: i32) -> (i32, i32) {
    %c0_i32 = arith.constant 0 : i32
    %c0_i32_0 = arith.constant 0 : i32
    %c0_i32_1 = arith.constant 0 : i32
    return %c0_i32, %c0_i32_0 : i32, i32
  }
  func.func @transform_3(%arg0: i32) -> (i32, i32) {
    %c0_i32 = arith.constant 0 : i32
    %c0_i32_0 = arith.constant 0 : i32
    %c0_i32_1 = arith.constant 0 : i32
    return %c0_i32, %c0_i32_0 : i32, i32
  }
  func.func @transform_4(%arg0: i32) -> (i32, i32) {
    %c0_i32 = arith.constant 0 : i32
    %c0_i32_0 = arith.constant 0 : i32
    return %arg0, %c0_i32 : i32, i32
  }
}

module attributes {stable_mosaic.version = 11 : i64} {
  func.func @_ln_kernel_std(%arg0: i32, %arg1: memref<16x32xf32, #tpu.memory_space<vmem>>, %arg2: memref<1x32xf32, #tpu.memory_space<vmem>>, %arg3: memref<1x32xf32, #tpu.memory_space<vmem>>, %arg4: memref<16x32xf32, #tpu.memory_space<vmem>>) attributes {dimension_semantics = [#tpu.dimension_semantics<parallel>], iteration_bounds = array<i64: 1>, scalar_prefetch = 0 : i64, scratch_operands = 0 : i64, tpu.core_type = #tpu.core_type<tc>, window_params = [{transform_indices = @transform_0, window_bounds = array<i64: 16, 32>}, {pipeline_mode = #tpu.pipeline_mode<synchronous>, transform_indices = @transform_1, window_bounds = array<i64: 1, 32>}, {pipeline_mode = #tpu.pipeline_mode<synchronous>, transform_indices = @transform_2, window_bounds = array<i64: 1, 32>}, {transform_indices = @transform_3, window_bounds = array<i64: 16, 32>}]} {
    %c0 = arith.constant 0 : index
    %c0_0 = arith.constant 0 : index
    %0 = vector.load %arg1[%c0, %c0_0] : memref<16x32xf32, #tpu.memory_space<vmem>>, vector<16x32xf32>
    %cst = arith.constant dense<0.000000e+00> : vector<16xf32>
    %1 = vector.multi_reduction <add>, %0, %cst [1] : vector<16x32xf32> to vector<16xf32>
    %2 = vector.shape_cast %1 : vector<16xf32> to vector<16x1xf32>
    %cst_1 = arith.constant 3.200000e+01 : f32
    %3 = vector.broadcast %cst_1 : f32 to vector<16x1xf32>
    %4 = arith.divf %2, %3 : vector<16x1xf32>
    %5 = arith.mulf %0, %0 : vector<16x32xf32>
    %cst_2 = arith.constant dense<0.000000e+00> : vector<16xf32>
    %6 = vector.multi_reduction <add>, %5, %cst_2 [1] : vector<16x32xf32> to vector<16xf32>
    %7 = vector.shape_cast %6 : vector<16xf32> to vector<16x1xf32>
    %cst_3 = arith.constant 3.200000e+01 : f32
    %8 = vector.broadcast %cst_3 : f32 to vector<16x1xf32>
    %9 = arith.divf %7, %8 : vector<16x1xf32>
    %10 = arith.mulf %4, %4 : vector<16x1xf32>
    %11 = arith.subf %9, %10 : vector<16x1xf32>
    %cst_4 = arith.constant 9.99999974E-6 : f32
    %12 = vector.broadcast %cst_4 : f32 to vector<16x1xf32>
    %13 = arith.addf %11, %12 : vector<16x1xf32>
    %14 = math.rsqrt %13 : vector<16x1xf32>
    %15 = vector.broadcast %4 : vector<16x1xf32> to vector<16x32xf32>
    %16 = arith.subf %0, %15 : vector<16x32xf32>
    %17 = vector.broadcast %14 : vector<16x1xf32> to vector<16x32xf32>
    %18 = arith.mulf %16, %17 : vector<16x32xf32>
    %c0_5 = arith.constant 0 : index
    %c0_6 = arith.constant 0 : index
    %19 = vector.load %arg2[%c0_5, %c0_6] : memref<1x32xf32, #tpu.memory_space<vmem>>, vector<1x32xf32>
    %20 = vector.broadcast %19 : vector<1x32xf32> to vector<16x32xf32>
    %21 = arith.mulf %18, %20 : vector<16x32xf32>
    %c0_7 = arith.constant 0 : index
    %c0_8 = arith.constant 0 : index
    %22 = vector.load %arg3[%c0_7, %c0_8] : memref<1x32xf32, #tpu.memory_space<vmem>>, vector<1x32xf32>
    %23 = vector.broadcast %22 : vector<1x32xf32> to vector<16x32xf32>
    %24 = arith.addf %21, %23 : vector<16x32xf32>
    %c0_9 = arith.constant 0 : index
    %c0_10 = arith.constant 0 : index
    %25 = vector.load %arg4[%c0_9, %c0_10] : memref<16x32xf32, #tpu.memory_space<vmem>>, vector<16x32xf32>
    tpu.vector_store %arg4[%c0_9, %c0_10], %24 {strides = array<i32>} : memref<16x32xf32, #tpu.memory_space<vmem>>, vector<16x32xf32>,
    return
  }
  func.func @transform_0(%arg0: i32) -> (i32, i32) {
    %c0_i32 = arith.constant 0 : i32
    %c0_i32_0 = arith.constant 0 : i32
    return %arg0, %c0_i32 : i32, i32
  }
  func.func @transform_1(%arg0: i32) -> (i32, i32) {
    %c0_i32 = arith.constant 0 : i32
    %c0_i32_0 = arith.constant 0 : i32
    %c0_i32_1 = arith.constant 0 : i32
    return %c0_i32, %c0_i32_0 : i32, i32
  }
  func.func @transform_2(%arg0: i32) -> (i32, i32) {
    %c0_i32 = arith.constant 0 : i32
    %c0_i32_0 = arith.constant 0 : i32
    %c0_i32_1 = arith.constant 0 : i32
    return %c0_i32, %c0_i32_0 : i32, i32
  }
  func.func @transform_3(%arg0: i32) -> (i32, i32) {
    %c0_i32 = arith.constant 0 : i32
    %c0_i32_0 = arith.constant 0 : i32
    return %arg0, %c0_i32 : i32, i32
  }
}

</mosaic_0001>

<bundles_post_ra>
// kernel: tpu_custom_call.1
= control target key start
LH: loop header
LB: loop body
LE: loop exit
PB: predicated region body
PF: predicated region fallthrough
CT: control target
= control target key end

     0   :  { %9 = vsyncpa [#allocation3], 0  ;;  %s2841_s0 = inlined_call_operand.hbm [shape: f32[4,128], index: 0, kind: input, shape index: {}]   ;;  %s2842_s1 = inlined_call_operand.hbm [shape: f32[128,128], index: 1, kind: input, shape index: {}]   ;;  %s2843_s2 = inlined_call_operand.vmem [shape: f32[1,128], index: 2, kind: input, shape index: {}]   ;;  %s2844_s3 = inlined_call_operand.vmem [shape: f32[1,128], index: 3, kind: input, shape index: {}]   ;;  %s2845_s4 = inlined_call_operand.hbm [shape: f32[4,128], index: 4, kind: output, shape index: {}]  }
   0x1   :  { %10 = vsyncpa [#allocation6], 0 }
   0x2   :  { %11 = vsyncpa [#allocation4], 0  ;;  %s2399_s15 = smov [#allocation2]   ;;  %s2400_s17 = smov [#allocation5]  }
   0x3   :  { %s18_s16 = sshll.u32 %s2399_s15, 4  ;;  %s27_s18 = sshll.u32 %s2400_s17, 4  ;;  %s19_s16 = int_to_ptr.vmem [resolvable:$true] %s18_s16  ;;  %s2432_s18 = int_to_ptr.vmem [resolvable:$true] %s27_s18 }
   0x4   :  { %s2327_s21 = scalar_lea.hbm %s2841_s0, 64 }
   0x5   :  { %p2328_p0 = scmp.ne.s32.totalorder %s2841_s0, %s2327_s21  ;;  %p2331_p1 = scmp.lt.u32.totalorder %s2327_s21, %s2841_s0 }
   0x7   :  { %p2333_p2 = pnand %p2331_p1, %p2328_p0 }
   0x9   :  { %2336 = shalt.err (!%p2333_p2)
}
   0xa   :  { %s2337_s26 = scalar_lea.vmem %s19_s16, 64  ;;  %p2342_p4 = scmp.lt.s32.totalorder %s19_s16, %s19_s16 }
   0xb   :  { %p2338_p3 = scmp.ne.s32.totalorder %s19_s16, %s2337_s26  ;;  %p2343_p5 = scmp.lt.s32.totalorder %s2337_s26, %s2337_s26 }
   0xd   :  { %p2344_p6 = por %p2343_p5, %p2342_p4 }
   0xf   :  { %p2345_p7 = pnand %p2344_p6, %p2338_p3 }
  0x11   :  { %2348 = shalt.err (!%p2345_p7)
}
  0x12   :  { %21 = dma.hbm_to_vmem [thread:$0]  %s2841_s0, 64, %s19_s16, [#allocation3]  }
  0x13   :  { %s2349_s5 = scalar_lea.hbm %s2842_s1, 2048 }
  0x14   :  { %p2350_p8 = scmp.ne.s32.totalorder %s2842_s1, %s2349_s5  ;;  %p2353_p9 = scmp.lt.u32.totalorder %s2349_s5, %s2842_s1 }
  0x16   :  { %p2355_p10 = pnand %p2353_p9, %p2350_p8 }
  0x18   :  { %2358 = shalt.err (!%p2355_p10)
}
  0x19   :  { %s2359_s10 = scalar_lea.vmem %s2432_s18, 2048  ;;  %p2364_p12 = scmp.lt.s32.totalorder %s2432_s18, %s2432_s18 }
  0x1a   :  { %p2360_p11 = scmp.ne.s32.totalorder %s2432_s18, %s2359_s10  ;;  %p2365_p13 = scmp.lt.s32.totalorder %s2359_s10, %s2359_s10 }
  0x1c   :  { %p2366_p0 = por %p2365_p13, %p2364_p12 }
  0x1e   :  { %p2367_p1 = pnand %p2366_p0, %p2360_p11 }
  0x20   :  { %2370 = shalt.err (!%p2367_p1)
}
  0x21   :  { %s2401_s0 = smov 128   ;;  %s2402_s11 = smov 8  }
  0x22   :  { %33 = dma.hbm_to_vmem [thread:$0]  %s2842_s1, 2048, %s2432_s18, [#allocation6], %s2401_s0, %s2401_s0, %s2402_s11  }
  0x23   :  { %2393 = dma.done.wait [#allocation3], 64  }
  0x24   :  { %2394 = vsyncadd [#allocation3], 4294967232 }
  0x25   :  { %2395 = dma.done.wait [#allocation6], 2048  }
  0x26   :  { %2396 = vsyncadd [#allocation6], 4294965248  ;;  %v2403_v0 = vmov 0.0|0.0   ;;  %vm2404_vm0 = vmmov 0   ;;  %v2405_v1 = vmov 0.0   ;;  %v45_v2 = vld [vmem:[#allocation5] sm:$0xff] }
  0x27   :  { %2009 = vmatprep.subr.bf16.mxu0 %v2403_v0  ;;  %2153 = vmatprep.subr.bf16.mxu1 %v2403_v0  ;;  %v46_v3 = vld [vmem:[#allocation5 + $0x8] sm:$0xff]  ;;  %v47_v4 = vld [vmem:[#allocation5 + $0x10] sm:$0xff]  ;;  %v62_v5 = vand.u32 4294901760, %v45_v2  ;;  %v48_v7 = vld [vmem:[#allocation5 + $0x18] sm:$0xff]  ;;  %s2406_s17 = smov [#allocation7]  }
  0x28   :  { %1621 = vmatprep.mubr.msk.f32.mxu0 %vm2404_vm0, %v2405_v1  ;;  %1831 = vmatprep.mubr.msk.f32.mxu1 %vm2404_vm0, %v2405_v1  ;;  %v65_v6 = vand.u32 4294901760, %v46_v3  ;;  %v68_v8 = vand.u32 4294901760, %v47_v4  ;;  %v71_v9 = vand.u32 4294901760, %v48_v7  ;;  %v2469_v10 = vld [vmem:[#allocation5 + $0x20] sm:$0xff]  ;;  %v2471_v11 = vld [vmem:[#allocation5 + $0x28] sm:$0xff]  ;;  %v2483_v16 = vld [vmem:[#allocation5 + $0x30] sm:$0xff] }
  0x29   :  { %v74_v14 = vand.u32 4294901760, %v2469_v10  ;;  %v77_v15 = vand.u32 4294901760, %v2471_v11  ;;  %v2485_v17 = vld [vmem:[#allocation5 + $0x38] sm:$0xff]  ;;  %v80_v20 = vand.u32 4294901760, %v2483_v16  ;;  %v53_v22 = vld [vmem:[#allocation5 + $0x40] sm:$0xff]  ;;  %v54_v23 = vld [vmem:[#allocation5 + $0x48] sm:$0xff]  ;;  %v2506_v35 = vsub.f32 %v45_v2, %v62_v5 }
  0x2a   :  { %v2473_v12 = vpack.c.bf16 %v65_v6, %v62_v5  ;;  %v2477_v13 = vpack.c.bf16 %v71_v9, %v68_v8  ;;  %v2487_v18 = vld [vmem:[#allocation2] sm:$0xf]  ;;  %v83_v21 = vand.u32 4294901760, %v2485_v17  ;;  %v55_v26 = vld [vmem:[#allocation5 + $0x50] sm:$0xff]  ;;  %v57_v28 = vld [vmem:[#allocation5 + $0x60] sm:$0xff]  ;;  %v86_v30 = vand.u32 4294901760, %v53_v22 }
  0x2b   :  { %v2491_v19 = vpack.c.bf16 %v77_v15, %v74_v14  ;;  %v2498_v24 = vand.u32 4294901760, %v2487_v18  ;;  %v702_v25 = vmul.f32 %v2487_v18, %v2487_v18  ;;  %v56_v27 = vld [vmem:[#allocation5 + $0x58] sm:$0xff]  ;;  %v89_v31 = vand.u32 4294901760, %v54_v23  ;;  %v58_v32 = vld [vmem:[#allocation5 + $0x68] sm:$0xff]  ;;  %v59_v33 = vld [vmem:[#allocation5 + $0x70] sm:$0xff]  ;;  %s1373_s18 = sshll.u32 %s2406_s17, 4  ;;  %s1374_s18 = int_to_ptr.vmem [resolvable:$true] %s1373_s18 }
  0x2c   :  { %2011 = vmatpush3.bf16.msra.mxu0 %v2473_v12  ;;  %2155 = vmatpush3.bf16.msra.mxu1 %v2473_v12  ;;  %v2504_v29 = vpack.c.bf16 %v83_v21, %v80_v20  ;;  %v60_v34 = vld [vmem:[#allocation5 + $0x78] sm:$0xff]  ;;  %v2514_v37 = vsub.f32 %v46_v3, %v65_v6  ;;  %v2516_v38 = vsub.f32 %v47_v4, %v68_v8  ;;  %v92_v39 = vand.u32 4294901760, %v55_v26  ;;  %s2371_s19 = scalar_lea.vmem %s1374_s18, 64  ;;  %p2376_p3 = scmp.lt.s32.totalorder %s1374_s18, %s1374_s18 }
  0x2d   :  { %2012 = vmatprep.subr.bf16.mxu0 %v2403_v0  ;;  %2156 = vmatprep.subr.bf16.mxu1 %v2403_v0  ;;  %v2512_v36 = vsub.f32 %v2487_v18, %v2498_v24  ;;  %v95_v40 = vand.u32 4294901760, %v56_v27  ;;  %v2518_v41 = vand.u32 4294901760, %v702_v25  ;;  %v98_v42 = vand.u32 4294901760, %v57_v28  ;;  %p2372_p2 = scmp.ne.s32.totalorder %s1374_s18, %s2371_s19  ;;  %p2377_p4 = scmp.lt.s32.totalorder %s2371_s19, %s2371_s19 }
  0x2e   :  { %v101_v43 = vand.u32 4294901760, %v58_v32  ;;  %v104_v44 = vand.u32 4294901760, %v59_v33  ;;  %v107_v45 = vand.u32 4294901760, %v60_v34  ;;  %v2522_v46 = vpack.c.bf16 %v89_v31, %v86_v30 }
  0x2f   :  { %v155_v47 = vand.u32 4294901760, %v2506_v35  ;;  %v2847_v48 = vand.u32 4294901760, %v2512_v36  ;;  %v162_v49 = vand.u32 4294901760, %v2514_v37  ;;  %v169_v50 = vand.u32 4294901760, %v2516_v38  ;;  %p2378_p5 = por %p2377_p4, %p2376_p3 }
  0x30   :  { %2014 = vmatpush3.bf16.msra.mxu0 %v2477_v13  ;;  %2158 = vmatpush3.bf16.msra.mxu1 %v2477_v13  ;;  %v2530_v51 = vsub.f32 %v48_v7, %v71_v9  ;;  %v2533_v52 = vsub.f32 %v702_v25, %v2518_v41  ;;  %v2535_v53 = vpack.c.bf16 %v95_v40, %v92_v39 }
  0x31   :  { %2015 = vmatprep.subr.bf16.mxu0 %v2403_v0  ;;  %2159 = vmatprep.subr.bf16.mxu1 %v2403_v0  ;;  %v2537_v54 = vpack.c.bf16 %v101_v43, %v98_v42  ;;  %v2539_v55 = vpack.c.bf16 %v107_v45, %v104_v44  ;;  %v156_v56 = vsub.f32 %v2506_v35, %v155_v47  ;;  %p2379_p6 = pnand %p2378_p5, %p2372_p2 }
  0x32   :  { %v2545_v57 = vsub.f32 %v2469_v10, %v74_v14  ;;  %v2548_v58 = vsub.f32 %v2471_v11, %v77_v15  ;;  %v145_v59 = vsub.f32 %v2512_v36, %v2847_v48  ;;  %v163_v60 = vsub.f32 %v2514_v37, %v162_v49 }
  0x33   :  { %v2557_v61 = vsub.f32 %v2516_v38, %v169_v50  ;;  %v176_v62 = vand.u32 4294901760, %v2530_v51  ;;  %v2846_v63 = vand.u32 4294901760, %v2533_v52  ;;  %v2562_v2 = vsub.f32 %v2483_v16, %v80_v20 }
  0x34   :  { %2017 = vmatpush3.bf16.msra.mxu0 %v2491_v19  ;;  %2161 = vmatpush3.bf16.msra.mxu1 %v2491_v19  ;;  %v2565_v3 = vsub.f32 %v2485_v17, %v83_v21  ;;  %v2567_v4 = vsub.f32 %v53_v22, %v86_v30  ;;  %v2569_v5 = vsub.f32 %v54_v23, %v89_v31  ;;  %v183_v9 = vand.u32 4294901760, %v2545_v57 }
  0x35   :  { %2018 = vmatprep.subr.bf16.mxu0 %v2403_v0  ;;  %2162 = vmatprep.subr.bf16.mxu1 %v2403_v0  ;;  %v2571_v6 = vsub.f32 %v55_v26, %v92_v39  ;;  %v2573_v7 = vsub.f32 %v56_v27, %v95_v40  ;;  %v2575_v8 = vsub.f32 %v57_v28, %v98_v42  ;;  %v157_v15 = vand.u32 4294901760, %v156_v56 }
  0x36   :  { %v2580_v10 = vsub.f32 %v58_v32, %v101_v43  ;;  %v2582_v11 = vsub.f32 %v59_v33, %v104_v44  ;;  %v2584_v14 = vsub.f32 %v60_v34, %v107_v45  ;;  %v164_v16 = vand.u32 4294901760, %v163_v60 }
  0x37   :  { %v177_v17 = vsub.f32 %v2530_v51, %v176_v62  ;;  %v190_v20 = vand.u32 4294901760, %v2548_v58  ;;  %v787_v21 = vsub.f32 %v2533_v52, %v2846_v63  ;;  %v197_v22 = vand.u32 4294901760, %v2562_v2 }
  0x38   :  { %2020 = vmatpush3.bf16.msra.mxu0 %v2504_v29  ;;  %2164 = vmatpush3.bf16.msra.mxu1 %v2504_v29  ;;  %v204_v23 = vand.u32 4294901760, %v2565_v3  ;;  %v211_v25 = vand.u32 4294901760, %v2567_v4  ;;  %v218_v26 = vand.u32 4294901760, %v2569_v5  ;;  %v225_v27 = vand.u32 4294901760, %v2571_v6 }
  0x39   :  { %2021 = vmatprep.subr.bf16.mxu0 %v2403_v0  ;;  %2165 = vmatprep.subr.bf16.mxu1 %v2403_v0  ;;  %v232_v28 = vand.u32 4294901760, %v2573_v7  ;;  %v239_v30 = vand.u32 4294901760, %v2575_v8  ;;  %v246_v31 = vand.u32 4294901760, %v2580_v10  ;;  %v253_v32 = vand.u32 4294901760, %v2582_v11 }
  0x3a   :  { %v2848_v33 = vand.u32 4294901760, %v2584_v14  ;;  %v2605_v34 = vpack.c.bf16 %v162_v49, %v155_v47  ;;  %v2609_v39 = vpack.c.bf16 %v176_v62, %v169_v50  ;;  %v2611_v40 = vpack.c.bf16 %v190_v20, %v183_v9 }
  0x3b   :  { %v2613_v42 = vpack.c.bf16 %v204_v23, %v197_v22  ;;  %v2615_v43 = vpack.c.bf16 %v218_v26, %v211_v25  ;;  %v2617_v44 = vpack.c.bf16 %v232_v28, %v225_v27  ;;  %v2619_v45 = vpack.c.bf16 %v246_v31, %v239_v30 }
  0x3c   :  { %2023 = vmatpush3.bf16.msra.mxu0 %v2522_v46  ;;  %2167 = vmatpush3.bf16.msra.mxu1 %v2522_v46  ;;  %v2625_v47 = vpack.c.bf16 %v2848_v33, %v253_v32  ;;  %v146_v49 = vand.u32 4294901760, %v145_v59  ;;  %v788_v56 = vand.u32 4294901760, %v787_v21  ;;  %v184_v50 = vsub.f32 %v2545_v57, %v183_v9 }
  0x3d   :  { %2024 = vmatprep.subr.bf16.mxu0 %v2403_v0  ;;  %2168 = vmatprep.subr.bf16.mxu1 %v2403_v0  ;;  %v191_v60 = vsub.f32 %v2548_v58, %v190_v20  ;;  %v2034_v62 = vpack.c.bf16 %v164_v16, %v157_v15  ;;  %v171_v63 = vand.u32 4294901760, %v2557_v61  ;;  %v178_v48 = vand.u32 4294901760, %v177_v17 }
  0x3e   :  { %v185_v59 = vand.u32 4294901760, %v184_v50  ;;  %v198_v20 = vsub.f32 %v2562_v2, %v197_v22  ;;  %v205_v33 = vsub.f32 %v2565_v3, %v204_v23  ;;  %v226_v17 = vsub.f32 %v2571_v6, %v225_v27 }
  0x3f   :  { %v192_v21 = vand.u32 4294901760, %v191_v60  ;;  %v2037_v9 = vpack.c.bf16 %v178_v48, %v171_v63  ;;  %v212_v48 = vsub.f32 %v2567_v4, %v211_v25  ;;  %v219_v63 = vsub.f32 %v2569_v5, %v218_v26 }
  0x40   :  { %2026 = vmatpush3.bf16.msra.mxu0 %v2535_v53  ;;  %2170 = vmatpush3.bf16.msra.mxu1 %v2535_v53  ;;  %v199_v15 = vand.u32 4294901760, %v198_v20  ;;  %v206_v16 = vand.u32 4294901760, %v205_v33  ;;  %v240_v25 = vsub.f32 %v2575_v8, %v239_v30  ;;  %v227_v33 = vand.u32 4294901760, %v226_v17 }
  0x41   :  { %2027 = vmatprep.subr.bf16.mxu0 %v2403_v0  ;;  %2171 = vmatprep.subr.bf16.mxu1 %v2403_v0  ;;  %v2040_v61 = vpack.c.bf16 %v192_v21, %v185_v59  ;;  %v213_v23 = vand.u32 4294901760, %v212_v48  ;;  %v247_v27 = vsub.f32 %v2580_v10, %v246_v31  ;;  %v254_v30 = vsub.f32 %v2582_v11, %v253_v32 }
  0x42   :  { %v2043_v22 = vpack.c.bf16 %v206_v16, %v199_v15  ;;  %v241_v60 = vand.u32 4294901760, %v240_v25  ;;  %v2849_v59 = vand.u32 4294901760, %v2584_v14  ;;  %v2061_v15 = vpack.c.bf16 %v2530_v51, %v2516_v38 }
  0x43   :  { %v2070_v38 = vpack.c.bf16 %v2569_v5, %v2567_v4  ;;  %v2073_v51 = vpack.c.bf16 %v2573_v7, %v2571_v6 }
  0x44   :  { %2029 = vmatpush3.bf16.msra.mxu0 %v2537_v54  ;;  %2173 = vmatpush3.bf16.msra.mxu1 %v2537_v54  ;;  %v261_v21 = vsub.f32 %v2584_v14, %v2849_v59 }
  0x45   :  { %2030 = vmatprep.subr.bf16.mxu0 %v2403_v0  ;;  %2174 = vmatprep.subr.bf16.mxu1 %v2403_v0 }
  0x46   :  { %v262_v20 = vand.u32 4294901760, %v261_v21 }
  0x48   :  { %2032 = vmatpush3.bf16.msra.mxu0 %v2539_v55  ;;  %2176 = vmatpush3.bf16.msra.mxu1 %v2539_v55 }
  0x49   :  { %2033 = vmatprep.subr.bf16.mxu0 %v2403_v0  ;;  %2177 = vmatprep.subr.bf16.mxu1 %v2403_v0 }
  0x4b   :  { %1622 = vmatmul.mubr.f32.vlgmr.msra.gmra.mrb[0].mxu0 %v146_v49  ;;  %1832 = vmatmul.mubr.f32.vlgmr.msra.gmra.mrb[0].mxu1 %v788_v56  ;;  %v220_v49 = vand.u32 4294901760, %v219_v63  ;;  %v233_v56 = vsub.f32 %v2573_v7, %v232_v28 }
  0x4c   :  { %2035 = vmatpush3.bf16.msra.mxu0 %v2034_v62  ;;  %2179 = vmatpush3.bf16.msra.mxu1 %v2034_v62  ;;  %v248_v62 = vand.u32 4294901760, %v247_v27 }
  0x4d   :  { %2036 = vmatprep.subr.bf16.mxu0 %v2403_v0  ;;  %2180 = vmatprep.subr.bf16.mxu1 %v2403_v0  ;;  %v2046_v26 = vpack.c.bf16 %v220_v49, %v213_v23  ;;  %v234_v50 = vand.u32 4294901760, %v233_v56 }
  0x4e   :  { %1656 = vmatprep.mubr.msk.f32.mxu0 %vm2404_vm0, %v2405_v1  ;;  %1866 = vmatprep.mubr.msk.f32.mxu1 %vm2404_vm0, %v2405_v1  ;;  %v2052_v31 = vpack.c.bf16 %v248_v62, %v241_v60 }
  0x4f   :  { %v2049_v28 = vpack.c.bf16 %v234_v50, %v227_v33 }
  0x50   :  { %2038 = vmatpush3.bf16.msra.mxu0 %v2037_v9  ;;  %2182 = vmatpush3.bf16.msra.mxu1 %v2037_v9  ;;  %v255_v9 = vand.u32 4294901760, %v254_v30 }
  0x51   :  { %2039 = vmatprep.subr.bf16.mxu0 %v2403_v0  ;;  %2183 = vmatprep.subr.bf16.mxu1 %v2403_v0 }
  0x52   :  { %v2055_v32 = vpack.c.bf16 %v262_v20, %v255_v9 }
  0x54   :  { %2041 = vmatpush3.bf16.msra.mxu0 %v2040_v61  ;;  %2185 = vmatpush3.bf16.msra.mxu1 %v2040_v61  ;;  %v2058_v61 = vpack.c.bf16 %v2514_v37, %v2506_v35  ;;  %v2064_v35 = vpack.c.bf16 %v2548_v58, %v2545_v57  ;;  %v2067_v37 = vpack.c.bf16 %v2565_v3, %v2562_v2  ;;  %v2850_v2 = vand.u32 4294901760, %v2512_v36 }
  0x55   :  { %2042 = vmatprep.subr.bf16.mxu0 %v2403_v0  ;;  %2186 = vmatprep.subr.bf16.mxu1 %v2403_v0  ;;  %v2076_v57 = vpack.c.bf16 %v2580_v10, %v2575_v8  ;;  %v2079_v58 = vpack.c.bf16 %v2584_v14, %v2582_v11  ;;  %v2851_v3 = vand.u32 4294901760, %v2533_v52 }
  0x58   :  { %2044 = vmatpush3.bf16.msra.mxu0 %v2043_v22  ;;  %2188 = vmatpush3.bf16.msra.mxu1 %v2043_v22 }
  0x59   :  { %2045 = vmatprep.subr.bf16.mxu0 %v2403_v0  ;;  %2189 = vmatprep.subr.bf16.mxu1 %v2403_v0 }
  0x5c   :  { %2047 = vmatpush3.bf16.msra.mxu0 %v2046_v26  ;;  %2191 = vmatpush3.bf16.msra.mxu1 %v2046_v26 }
  0x5d   :  { %2048 = vmatprep.subr.bf16.mxu0 %v2403_v0  ;;  %2192 = vmatprep.subr.bf16.mxu1 %v2403_v0 }
  0x60   :  { %2050 = vmatpush3.bf16.msra.mxu0 %v2049_v28  ;;  %2194 = vmatpush3.bf16.msra.mxu1 %v2049_v28 }
  0x61   :  { %2051 = vmatprep.subr.bf16.mxu0 %v2403_v0  ;;  %2195 = vmatprep.subr.bf16.mxu1 %v2403_v0 }
  0x64   :  { %2053 = vmatpush3.bf16.msra.mxu0 %v2052_v31  ;;  %2197 = vmatpush3.bf16.msra.mxu1 %v2052_v31 }
  0x65   :  { %2054 = vmatprep.subr.bf16.mxu0 %v2403_v0  ;;  %2198 = vmatprep.subr.bf16.mxu1 %v2403_v0 }
  0x68   :  { %2056 = vmatpush3.bf16.msra.mxu0 %v2055_v32  ;;  %2200 = vmatpush3.bf16.msra.mxu1 %v2055_v32 }
  0x69   :  { %2057 = vmatprep.subr.bf16.mxu0 %v2403_v0  ;;  %2201 = vmatprep.subr.bf16.mxu1 %v2403_v0 }
  0x6b   :  { %1657 = vmatmul.mubr.f32.vlgmr.msra.gmra.mrb[0].mxu0 %v2498_v24  ;;  %1867 = vmatmul.mubr.f32.vlgmr.msra.gmra.mrb[0].mxu1 %v2518_v41 }
  0x6c   :  { %2059 = vmatpush3.bf16.msra.mxu0 %v2058_v61  ;;  %2203 = vmatpush3.bf16.msra.mxu1 %v2058_v61 }
  0x6d   :  { %2060 = vmatprep.subr.bf16.mxu0 %v2403_v0  ;;  %2204 = vmatprep.subr.bf16.mxu1 %v2403_v0 }
  0x6e   :  { %1691 = vmatprep.mubr.msk.f32.mxu0 %vm2404_vm0, %v2405_v1  ;;  %1901 = vmatprep.mubr.msk.f32.mxu1 %vm2404_vm0, %v2405_v1 }
  0x70   :  { %2062 = vmatpush3.bf16.msra.mxu0 %v2061_v15  ;;  %2206 = vmatpush3.bf16.msra.mxu1 %v2061_v15 }
  0x71   :  { %2063 = vmatprep.subr.bf16.mxu0 %v2403_v0  ;;  %2207 = vmatprep.subr.bf16.mxu1 %v2403_v0 }
  0x74   :  { %2065 = vmatpush3.bf16.msra.mxu0 %v2064_v35  ;;  %2209 = vmatpush3.bf16.msra.mxu1 %v2064_v35 }
  0x75   :  { %2066 = vmatprep.subr.bf16.mxu0 %v2403_v0  ;;  %2210 = vmatprep.subr.bf16.mxu1 %v2403_v0 }
  0x78   :  { %2068 = vmatpush3.bf16.msra.mxu0 %v2067_v37  ;;  %2212 = vmatpush3.bf16.msra.mxu1 %v2067_v37 }
  0x79   :  { %2069 = vmatprep.subr.bf16.mxu0 %v2403_v0  ;;  %2213 = vmatprep.subr.bf16.mxu1 %v2403_v0 }
  0x7c   :  { %2071 = vmatpush3.bf16.msra.mxu0 %v2070_v38  ;;  %2215 = vmatpush3.bf16.msra.mxu1 %v2070_v38 }
  0x7d   :  { %2072 = vmatprep.subr.bf16.mxu0 %v2403_v0  ;;  %2216 = vmatprep.subr.bf16.mxu1 %v2403_v0 }
  0x80   :  { %2074 = vmatpush3.bf16.msra.mxu0 %v2073_v51  ;;  %2218 = vmatpush3.bf16.msra.mxu1 %v2073_v51 }
  0x81   :  { %2075 = vmatprep.subr.bf16.mxu0 %v2403_v0  ;;  %2219 = vmatprep.subr.bf16.mxu1 %v2403_v0 }
  0x84   :  { %2077 = vmatpush3.bf16.msra.mxu0 %v2076_v57  ;;  %2221 = vmatpush3.bf16.msra.mxu1 %v2076_v57 }
  0x85   :  { %2078 = vmatprep.subr.bf16.mxu0 %v2403_v0  ;;  %2222 = vmatprep.subr.bf16.mxu1 %v2403_v0 }
  0x88   :  { %2080 = vmatpush3.bf16.msra.mxu0 %v2079_v58  ;;  %2224 = vmatpush3.bf16.msra.mxu1 %v2079_v58 }
  0x89   :  { %2081 = vmatprep.subr.bf16.mxu0 %v2403_v0  ;;  %2225 = vmatprep.subr.bf16.mxu1 %v2403_v0 }
  0x8b   :  { %1692 = vmatmul.mubr.f32.vlgmr.msra.gmra.mrb[0].mxu0 %v2512_v36  ;;  %1902 = vmatmul.mubr.f32.vlgmr.msra.gmra.mrb[0].mxu1 %v2533_v52 }
  0x8c   :  { %2083 = vmatpush3.bf16.msra.mxu0 %v2473_v12  ;;  %2227 = vmatpush3.bf16.msra.mxu1 %v2473_v12 }
  0x8d   :  { %2084 = vmatprep.subr.bf16.mxu0 %v2403_v0  ;;  %2228 = vmatprep.subr.bf16.mxu1 %v2403_v0 }
  0x8e   :  { %1726 = vmatprep.mubr.msk.f32.mxu0 %vm2404_vm0, %v2405_v1  ;;  %1936 = vmatprep.mubr.msk.f32.mxu1 %vm2404_vm0, %v2405_v1 }
  0x90   :  { %2086 = vmatpush3.bf16.msra.mxu0 %v2477_v13  ;;  %2230 = vmatpush3.bf16.msra.mxu1 %v2477_v13 }
  0x91   :  { %2087 = vmatprep.subr.bf16.mxu0 %v2403_v0  ;;  %2231 = vmatprep.subr.bf16.mxu1 %v2403_v0 }
  0x94   :  { %2089 = vmatpush3.bf16.msra.mxu0 %v2491_v19  ;;  %2233 = vmatpush3.bf16.msra.mxu1 %v2491_v19 }
  0x95   :  { %2090 = vmatprep.subr.bf16.mxu0 %v2403_v0  ;;  %2234 = vmatprep.subr.bf16.mxu1 %v2403_v0 }
  0x98   :  { %2092 = vmatpush3.bf16.msra.mxu0 %v2504_v29  ;;  %2236 = vmatpush3.bf16.msra.mxu1 %v2504_v29 }
  0x99   :  { %2093 = vmatprep.subr.bf16.mxu0 %v2403_v0  ;;  %2237 = vmatprep.subr.bf16.mxu1 %v2403_v0 }
  0x9c   :  { %2095 = vmatpush3.bf16.msra.mxu0 %v2522_v46  ;;  %2239 = vmatpush3.bf16.msra.mxu1 %v2522_v46 }
  0x9d   :  { %2096 = vmatprep.subr.bf16.mxu0 %v2403_v0  ;;  %2240 = vmatprep.subr.bf16.mxu1 %v2403_v0 }
  0xa0   :  { %2098 = vmatpush3.bf16.msra.mxu0 %v2535_v53  ;;  %2242 = vmatpush3.bf16.msra.mxu1 %v2535_v53 }
  0xa1   :  { %2099 = vmatprep.subr.bf16.mxu0 %v2403_v0  ;;  %2243 = vmatprep.subr.bf16.mxu1 %v2403_v0 }
  0xa4   :  { %2101 = vmatpush3.bf16.msra.mxu0 %v2537_v54  ;;  %2245 = vmatpush3.bf16.msra.mxu1 %v2537_v54 }
  0xa5   :  { %2102 = vmatprep.subr.bf16.mxu0 %v2403_v0  ;;  %2246 = vmatprep.subr.bf16.mxu1 %v2403_v0 }
  0xa8   :  { %2104 = vmatpush3.bf16.msra.mxu0 %v2539_v55  ;;  %2248 = vmatpush3.bf16.msra.mxu1 %v2539_v55 }
  0xa9   :  { %2105 = vmatprep.subr.bf16.mxu0 %v2403_v0  ;;  %2249 = vmatprep.subr.bf16.mxu1 %v2403_v0 }
  0xab   :  { %1727 = vmatmul.mubr.f32.vlgmr.msra.gmra.mrb[0].mxu0 %v2850_v2  ;;  %1937 = vmatmul.mubr.f32.vlgmr.msra.gmra.mrb[0].mxu1 %v2851_v3 }
  0xac   :  { %2107 = vmatpush3.bf16.msra.mxu0 %v2605_v34  ;;  %2251 = vmatpush3.bf16.msra.mxu1 %v2605_v34 }
  0xad   :  { %2108 = vmatprep.subr.bf16.mxu0 %v2403_v0  ;;  %2252 = vmatprep.subr.bf16.mxu1 %v2403_v0 }
  0xae   :  { %1761 = vmatprep.mubr.msk.f32.mxu0 %vm2404_vm0, %v2405_v1  ;;  %1971 = vmatprep.mubr.msk.f32.mxu1 %vm2404_vm0, %v2405_v1 }
  0xb0   :  { %2110 = vmatpush3.bf16.msra.mxu0 %v2609_v39  ;;  %2254 = vmatpush3.bf16.msra.mxu1 %v2609_v39 }
  0xb1   :  { %2111 = vmatprep.subr.bf16.mxu0 %v2403_v0  ;;  %2255 = vmatprep.subr.bf16.mxu1 %v2403_v0 }
  0xb4   :  { %2113 = vmatpush3.bf16.msra.mxu0 %v2611_v40  ;;  %2257 = vmatpush3.bf16.msra.mxu1 %v2611_v40 }
  0xb5   :  { %2114 = vmatprep.subr.bf16.mxu0 %v2403_v0  ;;  %2258 = vmatprep.subr.bf16.mxu1 %v2403_v0 }
  0xb8   :  { %2116 = vmatpush3.bf16.msra.mxu0 %v2613_v42  ;;  %2260 = vmatpush3.bf16.msra.mxu1 %v2613_v42 }
  0xb9   :  { %2117 = vmatprep.subr.bf16.mxu0 %v2403_v0  ;;  %2261 = vmatprep.subr.bf16.mxu1 %v2403_v0 }
  0xbc   :  { %2119 = vmatpush3.bf16.msra.mxu0 %v2615_v43  ;;  %2263 = vmatpush3.bf16.msra.mxu1 %v2615_v43 }
  0xbd   :  { %2120 = vmatprep.subr.bf16.mxu0 %v2403_v0  ;;  %2264 = vmatprep.subr.bf16.mxu1 %v2403_v0 }
  0xc0   :  { %2122 = vmatpush3.bf16.msra.mxu0 %v2617_v44  ;;  %2266 = vmatpush3.bf16.msra.mxu1 %v2617_v44 }
  0xc1   :  { %2123 = vmatprep.subr.bf16.mxu0 %v2403_v0  ;;  %2267 = vmatprep.subr.bf16.mxu1 %v2403_v0 }
  0xc4   :  { %2125 = vmatpush3.bf16.msra.mxu0 %v2619_v45  ;;  %2269 = vmatpush3.bf16.msra.mxu1 %v2619_v45 }
  0xc5   :  { %2126 = vmatprep.subr.bf16.mxu0 %v2403_v0  ;;  %2270 = vmatprep.subr.bf16.mxu1 %v2403_v0 }
  0xc8   :  { %2128 = vmatpush3.bf16.msra.mxu0 %v2625_v47  ;;  %2272 = vmatpush3.bf16.msra.mxu1 %v2625_v47 }
  0xc9   :  { %2129 = vmatprep.subr.bf16.mxu0 %v2403_v0  ;;  %2273 = vmatprep.subr.bf16.mxu1 %v2403_v0 }
  0xcb   :  { %1762 = vmatmul.mubr.f32.vlgmr.msra.gmra.mrb[0].mxu0 %v2498_v24  ;;  %1972 = vmatmul.mubr.f32.vlgmr.msra.gmra.mrb[0].mxu1 %v2518_v41 }
  0xcc   :  { %2131 = vmatpush3.bf16.msra.mxu0 %v2473_v12  ;;  %2275 = vmatpush3.bf16.msra.mxu1 %v2473_v12 }
  0xcd   :  { %2132 = vmatprep.subr.bf16.mxu0 %v2403_v0  ;;  %2276 = vmatprep.subr.bf16.mxu1 %v2403_v0 }
  0xce   :  { %1796 = vmatprep.mubr.msk.f32.mxu0 %vm2404_vm0, %v2405_v1  ;;  %2006 = vmatprep.mubr.msk.f32.mxu1 %vm2404_vm0, %v2405_v1 }
  0xd0   :  { %2134 = vmatpush3.bf16.msra.mxu0 %v2477_v13  ;;  %2278 = vmatpush3.bf16.msra.mxu1 %v2477_v13 }
  0xd1   :  { %2135 = vmatprep.subr.bf16.mxu0 %v2403_v0  ;;  %2279 = vmatprep.subr.bf16.mxu1 %v2403_v0 }
  0xd4   :  { %2137 = vmatpush3.bf16.msra.mxu0 %v2491_v19  ;;  %2281 = vmatpush3.bf16.msra.mxu1 %v2491_v19 }
  0xd5   :  { %2138 = vmatprep.subr.bf16.mxu0 %v2403_v0  ;;  %2282 = vmatprep.subr.bf16.mxu1 %v2403_v0 }
  0xd8   :  { %2140 = vmatpush3.bf16.msra.mxu0 %v2504_v29  ;;  %2284 = vmatpush3.bf16.msra.mxu1 %v2504_v29 }
  0xd9   :  { %2141 = vmatprep.subr.bf16.mxu0 %v2403_v0  ;;  %2285 = vmatprep.subr.bf16.mxu1 %v2403_v0 }
  0xdc   :  { %2143 = vmatpush3.bf16.msra.mxu0 %v2522_v46  ;;  %2287 = vmatpush3.bf16.msra.mxu1 %v2522_v46 }
  0xdd   :  { %2144 = vmatprep.subr.bf16.mxu0 %v2403_v0  ;;  %2288 = vmatprep.subr.bf16.mxu1 %v2403_v0 }
  0xe0   :  { %2146 = vmatpush3.bf16.msra.mxu0 %v2535_v53  ;;  %2290 = vmatpush3.bf16.msra.mxu1 %v2535_v53 }
  0xe1   :  { %2147 = vmatprep.subr.bf16.mxu0 %v2403_v0  ;;  %2291 = vmatprep.subr.bf16.mxu1 %v2403_v0 }
  0xe4   :  { %2149 = vmatpush3.bf16.msra.mxu0 %v2537_v54  ;;  %2293 = vmatpush3.bf16.msra.mxu1 %v2537_v54 }
  0xe5   :  { %2150 = vmatprep.subr.bf16.mxu0 %v2403_v0  ;;  %2294 = vmatprep.subr.bf16.mxu1 %v2403_v0  ;;  %v1383_v0 = vld [vmem:[%s2843_s2] ss:$0 sm:$0xff] }
  0xe8   :  { %2152 = vmatpush3.bf16.msra.mxu0 %v2539_v55  ;;  %2296 = vmatpush3.bf16.msra.mxu1 %v2539_v55 }
  0xeb   :  { %1797 = vmatmul.mubr.f32.vlgmr.msra.gmra.mrb[0].mxu0 %v2498_v24  ;;  %2007 = vmatmul.mubr.f32.vlgmr.msra.gmra.mrb[0].mxu1 %v2518_v41  ;;  %v1384_v24 = vld [vmem:[%s2844_s3] ss:$0 sm:$0xff] }
 0x1be   :  { %v698_v1 = vpop.f32.mrb[0].mxu0  ;;  %v1340_v12 = vpop.f32.mrb[0].mxu1 }
 0x1bf   :  { %v1344_v13 = vmul.f32 %v698_v1, %v698_v1  ;;  %v1798_v19 = vpop.f32.mrb[1].mxu0  ;;  %v2008_v29 = vpop.f32.mrb[1].mxu1  ;;  %v1348_v52 = vsub.f32 %v2487_v18, %v698_v1 }
 0x1c1   :  { %v1345_v36 = vsub.f32 %v1340_v12, %v1344_v13 }
 0x1c3   :  { %v1346_v46 = vadd.f32 1e-05, %v1345_v36 }
 0x1c5   :  { %2325 = vrsqrt.f32 %v1346_v46 }
 0x1cf   :  { %v2326_v53 = vpop.eup %2325 }
 0x1d0   :  { %v1349_v54 = vmul.f32 %v2326_v53, %v1348_v52 }
 0x1d2   :  { %v1357_v41 = vmul.f32 %v1383_v0, %v1349_v54 }
 0x1d4   :  { %v1365_v55 = vadd.f32 %v1384_v24, %v1357_v41 }
 0x1d6   :  { %1366 = vst [vmem:[#allocation7] sm:$0xf] %v1365_v55 }
 0x1d7   :  { %2382 = shalt.err (!%p2379_p6)
}
 0x1d8   :  { %s2383_s21 = scalar_lea.hbm %s2845_s4, 64 }
 0x1d9   :  { %p2384_p7 = scmp.ne.s32.totalorder %s2845_s4, %s2383_s21  ;;  %p2387_p8 = scmp.lt.u32.totalorder %s2383_s21, %s2845_s4 }
 0x1db   :  { %p2389_p9 = pnand %p2387_p8, %p2384_p7 }
 0x1dd   :  { %2392 = shalt.err (!%p2389_p9)
}
 0x1de   :  { %1376 = dma.vmem_to_hbm [thread:$0]  %s1374_s18, 64, %s2845_s4, [#allocation4]  }
 0x1df   :  { %2397 = dma.done.wait [#allocation4], 64  }
 0x1e0   :  { %2398 = vsyncadd [#allocation4], 4294967232 }
 0x1e1   :  { %1380 = vsyncpa [#allocation3], 1 }
 0x1e2   :  { %1381 = vsyncpa [#allocation6], 1 }
 0x1e3   :  { %1382 = vsyncpa [#allocation4], 1 }

// kernel: tpu_custom_call.1
= control target key start
LH: loop header
LB: loop body
LE: loop exit
PB: predicated region body
PF: predicated region fallthrough
CT: control target
= control target key end

     0   :  { %8 = vsyncpa [#allocation3], 0  ;;  %s224_s0 = inlined_call_operand.hbm [shape: f32[16,32], index: 0, kind: input, shape index: {}]   ;;  %s225_s1 = inlined_call_operand.vmem [shape: f32[1,32], index: 1, kind: input, shape index: {}]   ;;  %s226_s2 = inlined_call_operand.vmem [shape: f32[1,32], index: 2, kind: input, shape index: {}]   ;;  %s227_s3 = inlined_call_operand.hbm [shape: f32[16,32], index: 3, kind: output, shape index: {}]  }
   0x1   :  { %9 = vsyncpa [#allocation4], 0  ;;  %s158_s12 = smov [#allocation2]   ;;  %s110_s16 = scalar_lea.hbm %s224_s0, 256 }
   0x2   :  { %s15_s13 = sshll.u32 %s158_s12, 4  ;;  %p111_p0 = scmp.ne.s32.totalorder %s224_s0, %s110_s16  ;;  %s16_s13 = int_to_ptr.vmem [resolvable:$true] %s15_s13 }
   0x3   :  { %p114_p1 = scmp.lt.u32.totalorder %s110_s16, %s224_s0 }
   0x5   :  { %p116_p2 = pnand %p114_p1, %p111_p0 }
   0x7   :  { %119 = shalt.err (!%p116_p2)
}
   0x8   :  { %s120_s21 = scalar_lea.vmem %s16_s13, 256  ;;  %p125_p4 = scmp.lt.s32.totalorder %s16_s13, %s16_s13 }
   0x9   :  { %p121_p3 = scmp.ne.s32.totalorder %s16_s13, %s120_s21  ;;  %p126_p5 = scmp.lt.s32.totalorder %s120_s21, %s120_s21 }
   0xb   :  { %p127_p6 = por %p126_p5, %p125_p4 }
   0xd   :  { %p128_p7 = pnand %p127_p6, %p121_p3 }
   0xf   :  { %131 = shalt.err (!%p128_p7)
}
  0x10   :  { %s159_s22 = smov 128   ;;  %s160_s23 = smov 8  }
  0x11   :  { %21 = dma.hbm_to_vmem [thread:$0]  %s224_s0, 256, %s16_s13, [#allocation3], %s159_s22, %s159_s22, %s160_s23  }
  0x12   :  { %154 = dma.done.wait [#allocation3], 256  }
  0x13   :  { %155 = vsyncadd [#allocation3], 4294967040  ;;  %vm31_vm0 = vcmask 261120   ;;  %v29_v0 = vld [vmem:[#allocation2] sm:$0xff]  ;;  %v30_v1 = vld [vmem:[#allocation2 + $0x8] sm:$0xff]  ;;  %s161_s29 = smov [#allocation5]  }
  0x14   :  { %v32_v2 = vsel %vm31_vm0, %v29_v0, 0.0  ;;  %v41_v3 = vmul.f32 %v29_v0, %v29_v0  ;;  %v42_v4 = vmul.f32 %v30_v1, %v30_v1  ;;  %v35_v6 = vsel %vm31_vm0, %v30_v1, 0.0  ;;  %v100_v24 = vld [vmem:[%s225_s1] ss:$0 sm:$0xff]  ;;  %s88_s30 = sshll.u32 %s161_s29, 4  ;;  %s89_s30 = int_to_ptr.vmem [resolvable:$true] %s88_s30 }
  0x15   :  { %33 = vadd.xlane.f32.xlu0 %v32_v2  ;;  %v101_v26 = vld [vmem:[%s226_s2] ss:$0 sm:$0xff]  ;;  %s132_s1 = scalar_lea.vmem %s89_s30, 256  ;;  %p137_p9 = scmp.lt.s32.totalorder %s89_s30, %s89_s30 }
  0x16   :  { %v43_v5 = vsel %vm31_vm0, %v41_v3, 0.0  ;;  %v46_v7 = vsel %vm31_vm0, %v42_v4, 0.0  ;;  %p133_p8 = scmp.ne.s32.totalorder %s89_s30, %s132_s1  ;;  %p138_p10 = scmp.lt.s32.totalorder %s132_s1, %s132_s1 }
  0x17   :  { %44 = vadd.xlane.f32.xlu1 %v43_v5 }
  0x18   :  { %p139_p11 = por %p138_p10, %p137_p9 }
  0x19   :  { %36 = vadd.xlane.f32.xlu0 %v35_v6 }
  0x1a   :  { %p140_p12 = pnand %p139_p11, %p133_p8 }
  0x1b   :  { %47 = vadd.xlane.f32.xlu1 %v46_v7 }
  0xa2   :  { %v34_v8 = vpop.xlane.xlu0 %33 }
  0xa3   :  { %v39_v9 = vmul.f32 0.03125, %v34_v8 }
  0xa4   :  { %v45_v10 = vpop.xlane.xlu1 %44 }
  0xa5   :  { %v51_v11 = vmul.f32 %v39_v9, %v39_v9  ;;  %v49_v12 = vmul.f32 0.03125, %v45_v10  ;;  %v59_v22 = vsub.f32 %v29_v0, %v39_v9 }
  0xa6   :  { %v37_v13 = vpop.xlane.xlu0 %36 }
  0xa7   :  { %v53_v14 = vsub.f32 %v49_v12, %v51_v11  ;;  %v40_v15 = vmul.f32 0.03125, %v37_v13 }
  0xa8   :  { %v48_v16 = vpop.xlane.xlu1 %47 }
  0xa9   :  { %v55_v17 = vadd.f32 1e-05, %v53_v14  ;;  %v52_v18 = vmul.f32 %v40_v15, %v40_v15  ;;  %v50_v19 = vmul.f32 0.03125, %v48_v16  ;;  %v60_v27 = vsub.f32 %v30_v1, %v40_v15 }
  0xab   :  { %106 = vrsqrt.f32 %v55_v17  ;;  %v54_v20 = vsub.f32 %v50_v19, %v52_v18 }
  0xad   :  { %v56_v21 = vadd.f32 1e-05, %v54_v20 }
  0xaf   :  { %108 = vrsqrt.f32 %v56_v21 }
  0xb5   :  { %v107_v23 = vpop.eup %106 }
  0xb6   :  { %v61_v25 = vmul.f32 %v107_v23, %v59_v22 }
  0xb8   :  { %v70_v28 = vmul.f32 %v100_v24, %v61_v25 }
  0xb9   :  { %v109_v29 = vpop.eup %108 }
  0xba   :  { %v62_v30 = vmul.f32 %v109_v29, %v60_v27  ;;  %v79_v31 = vadd.f32 %v101_v26, %v70_v28 }
  0xbc   :  { %v71_v32 = vmul.f32 %v100_v24, %v62_v30  ;;  %81 = vst.msk [vmem:[#allocation5] sm:$0xff] %vm31_vm0, %v79_v31 }
  0xbe   :  { %v80_v33 = vadd.f32 %v101_v26, %v71_v32 }
  0xc0   :  { %82 = vst.msk [vmem:[#allocation5 + $0x8] sm:$0xff] %vm31_vm0, %v80_v33 }
  0xc1   :  { %143 = shalt.err (!%p140_p12)
}
  0xc2   :  { %s144_s5 = scalar_lea.hbm %s227_s3, 256 }
  0xc3   :  { %p145_p13 = scmp.ne.s32.totalorder %s227_s3, %s144_s5  ;;  %p148_p0 = scmp.lt.u32.totalorder %s144_s5, %s227_s3 }
  0xc5   :  { %p150_p1 = pnand %p148_p0, %p145_p13 }
  0xc7   :  { %153 = shalt.err (!%p150_p1)
}
  0xc8   :  { %94 = dma.vmem_to_hbm [thread:$0]  %s89_s30, 256, %s227_s3, [#allocation4], %s159_s22, %s159_s22, %s160_s23  }
  0xc9   :  { %156 = dma.done.wait [#allocation4], 256  }
  0xca   :  { %157 = vsyncadd [#allocation4], 4294967040 }
  0xcb   :  { %98 = vsyncpa [#allocation3], 1 }
  0xcc   :  { %99 = vsyncpa [#allocation4], 1 }

</bundles_post_ra>
